<compile_context>
chip_gen: v6e
topology: v6e:2x2x1
jax: 0.10.0
libtpu: 0.0.40
codegen_flags: <defaults>
</compile_context>

<pallas_src>
import functools

import jax
import jax.numpy as jnp
from jax.experimental import pallas as pl
from jax.experimental.pallas import tpu as pltpu


def _actor_kernel(x_ref, w1_ref, b1_ref, w2_ref, b2_ref, w3_ref, b3_ref,
                  o_ref, *, max_action):
    # Layer 1: [bm, S] @ [S, 512] + [1, 512], ReLU  (bf16 in, f32 accumulate)
    h1 = jnp.dot(x_ref[...], w1_ref[...], preferred_element_type=jnp.float32)
    h1 = jnp.maximum(h1 + b1_ref[...], 0.0)
    # Layer 2: [bm, 512] @ [512, 256] + [1, 256], ReLU
    h2 = jnp.dot(h1.astype(w2_ref.dtype), w2_ref[...],
                 preferred_element_type=jnp.float32)
    h2 = jnp.maximum(h2 + b2_ref[...], 0.0)
    # Layer 3: [bm, 256] @ [256, A_pad] + [1, A_pad], tanh, scale (f32 epilogue)
    h3 = jnp.dot(h2.astype(w3_ref.dtype), w3_ref[...],
                 preferred_element_type=jnp.float32)
    o_ref[...] = (max_action * jnp.tanh(h3 + b3_ref[...])).astype(o_ref.dtype)


def _round_up(x, m):
    return ((x + m - 1) // m) * m


def _choose_batch_tile(batch, block_batch):
    """Pick a batch tile: 16-row granularity (bf16-friendly sublanes), big
    MXU-friendly tiles, and >=2 grid steps when the batch allows (v7x 2-TC)."""
    bg = _round_up(batch, 16)
    bm = min(block_batch, bg)
    if bg > 16 and bg // bm < 2:
        bm = max(16, _round_up(bg // 2, 16))
    b_pad = _round_up(bg, bm)
    return bm, b_pad


def actor_forward(x, params, max_action, *, block_batch=256,
                  matmul_dtype=jnp.bfloat16):
    """x: [B, state_dim] float32. Returns [B, action_dim] float32."""
    w1, b1, w2, b2, w3, b3 = params
    B, S = x.shape
    A = w3.shape[1]

    # Lane-dense layer-3 output: pad action dim up to a multiple of 128 and
    # slice it back after the call. Padded columns are exact zeros.
    A_pad = max(128, _round_up(A, 128))
    if A_pad != A:
        w3 = jnp.pad(w3, ((0, 0), (0, A_pad - A)))
        b3 = jnp.pad(b3, ((0, A_pad - A),))

    # Batch tiling (entire weight set is <1 MB, so VMEM is never the limit
    # even on v7x's 64 MiB / 32 MiB-scoped budget at these tile sizes).
    bm, B_pad = _choose_batch_tile(B, block_batch)
    if B_pad != B:
        x = jnp.pad(x, ((0, B_pad - B), (0, 0)))

    # bf16 matmul inputs (halves weight traffic, doubles MXU rate); biases and
    # all elementwise math stay f32.
    xq = x.astype(matmul_dtype)
    w1q = w1.astype(matmul_dtype)
    w2q = w2.astype(matmul_dtype)
    w3q = w3.astype(matmul_dtype)
    b1r = b1.reshape(1, -1).astype(jnp.float32)
    b2r = b2.reshape(1, -1).astype(jnp.float32)
    b3r = b3.reshape(1, -1).astype(jnp.float32)

    kernel = functools.partial(_actor_kernel, max_action=float(max_action))

    out = pl.pallas_call(
        kernel,
        out_shape=jax.ShapeDtypeStruct((B_pad, A_pad), jnp.float32),
        grid=(B_pad // bm,),
        in_specs=[
            pl.BlockSpec((bm, S), lambda i: (i, 0)),        # x tile
            pl.BlockSpec(w1q.shape, lambda i: (0, 0)),      # W1 (resident)
            pl.BlockSpec(b1r.shape, lambda i: (0, 0)),      # b1
            pl.BlockSpec(w2q.shape, lambda i: (0, 0)),      # W2 (resident)
            pl.BlockSpec(b2r.shape, lambda i: (0, 0)),      # b2
            pl.BlockSpec(w3q.shape, lambda i: (0, 0)),      # W3 (resident)
            pl.BlockSpec(b3r.shape, lambda i: (0, 0)),      # b3
        ],
        out_specs=pl.BlockSpec((bm, A_pad), lambda i: (i, 0)),
        compiler_params=pltpu.CompilerParams(
            dimension_semantics=("parallel",)),
    )(xq, w1q, b1r, w2q, b2r, w3q, b3r)

    return out[:B, :A]


def init_actor_params(key, state_dim, action_dim):
    """Deterministic init mirroring the nn.Linear shapes (weights stored
    transposed as [in, out] for the kernel)."""
    k1, k2, k3, k4, k5, k6 = jax.random.split(key, 6)

    def uniform_linear(kw, kb, fan_in, fan_out):
        bound = 1.0 / jnp.sqrt(fan_in)
        w = jax.random.uniform(kw, (fan_in, fan_out), jnp.float32, -bound, bound)
        b = jax.random.uniform(kb, (fan_out,), jnp.float32, -bound, bound)
        return w, b

    w1, b1 = uniform_linear(k1, k2, state_dim, 512)
    w2, b2 = uniform_linear(k3, k4, 512, 256)
    w3, b3 = uniform_linear(k5, k6, 256, action_dim)
    return (w1, b1, w2, b2, w3, b3)


def actor_reference(x, params, max_action):
    w1, b1, w2, b2, w3, b3 = params
    h = jnp.maximum(x @ w1 + b1, 0.0)
    h = jnp.maximum(h @ w2 + b2, 0.0)
    return max_action * jnp.tanh(h @ w3 + b3)


if __name__ == "__main__":
    state_dim = 16
    action_dim = 8
    max_action = 2.0
    batch = 8

    key = jax.random.PRNGKey(0)
    kx, kp = jax.random.split(key)
    x = jax.random.normal(kx, (batch, state_dim), jnp.float32)
    params = init_actor_params(kp, state_dim, action_dim)

    out = actor_forward(x, params, max_action)
    out = jax.block_until_ready(out)

    ref = actor_reference(x, params, max_action)
    assert out.shape == (batch, action_dim)
    # bf16 matmul inputs (f32 accumulate) -> looser tolerance than pure f32.
    assert jnp.allclose(out, ref, atol=5e-2, rtol=5e-2), "mismatch vs reference"

    # Also exercise a multi-tile batch (grid >= 2) to cover the tiled path.
    xb = jax.random.normal(kx, (300, state_dim), jnp.float32)
    outb = jax.block_until_ready(actor_forward(xb, params, max_action))
    refb = actor_reference(xb, params, max_action)
    assert outb.shape == (300, action_dim)
    assert jnp.allclose(outb, refb, atol=5e-2, rtol=5e-2), "mismatch (tiled)"

    print("KERNEL_OK")
</pallas_src>

<mosaic_0001>
module attributes {stable_mosaic.version = 11 : i64} {
  func.func @_actor_kernel(%arg0: i32, %arg1: memref<16x16xbf16, #tpu.memory_space<vmem>>, %arg2: memref<16x512xbf16, #tpu.memory_space<vmem>>, %arg3: memref<1x512xf32, #tpu.memory_space<vmem>>, %arg4: memref<512x256xbf16, #tpu.memory_space<vmem>>, %arg5: memref<1x256xf32, #tpu.memory_space<vmem>>, %arg6: memref<256x128xbf16, #tpu.memory_space<vmem>>, %arg7: memref<1x128xf32, #tpu.memory_space<vmem>>, %arg8: memref<16x128xf32, #tpu.memory_space<vmem>>) attributes {dimension_semantics = [#tpu.dimension_semantics<parallel>], iteration_bounds = array<i64: 1>, scalar_prefetch = 0 : i64, scratch_operands = 0 : i64, tpu.core_type = #tpu.core_type<tc>, window_params = [{transform_indices = @transform_0, window_bounds = array<i64: 16, 16>}, {pipeline_mode = #tpu.pipeline_mode<synchronous>, transform_indices = @transform_1, window_bounds = array<i64: 16, 512>}, {pipeline_mode = #tpu.pipeline_mode<synchronous>, transform_indices = @transform_2, window_bounds = array<i64: 1, 512>}, {pipeline_mode = #tpu.pipeline_mode<synchronous>, transform_indices = @transform_3, window_bounds = array<i64: 512, 256>}, {pipeline_mode = #tpu.pipeline_mode<synchronous>, transform_indices = @transform_4, window_bounds = array<i64: 1, 256>}, {pipeline_mode = #tpu.pipeline_mode<synchronous>, transform_indices = @transform_5, window_bounds = array<i64: 256, 128>}, {pipeline_mode = #tpu.pipeline_mode<synchronous>, transform_indices = @transform_6, window_bounds = array<i64: 1, 128>}, {transform_indices = @transform_7, window_bounds = array<i64: 16, 128>}]} {
    %c0 = arith.constant 0 : index
    %c0_0 = arith.constant 0 : index
    %0 = vector.load %arg1[%c0, %c0_0] : memref<16x16xbf16, #tpu.memory_space<vmem>>, vector<16x16xbf16>
    %c0_1 = arith.constant 0 : index
    %c0_2 = arith.constant 0 : index
    %1 = vector.load %arg2[%c0_1, %c0_2] : memref<16x512xbf16, #tpu.memory_space<vmem>>, vector<16x512xbf16>
    %cst = arith.constant dense<0.000000e+00> : vector<16x512xf32>
    %2 = tpu.matmul %0, %1, %cst {dimension_numbers = #tpu.dot_dimension_numbers<[1], [0], [0], [1], [0, 0, 1, 1], [], []>} : vector<16x16xbf16>, vector<16x512xbf16>, vector<16x512xf32> -> vector<16x512xf32>
    %c0_3 = arith.constant 0 : index
    %c0_4 = arith.constant 0 : index
    %3 = vector.load %arg3[%c0_3, %c0_4] : memref<1x512xf32, #tpu.memory_space<vmem>>, vector<1x512xf32>
    %4 = vector.broadcast %3 : vector<1x512xf32> to vector<16x512xf32>
    %5 = arith.addf %2, %4 : vector<16x512xf32>
    %cst_5 = arith.constant 0.000000e+00 : f32
    %6 = vector.broadcast %cst_5 : f32 to vector<16x512xf32>
    %7 = arith.maximumf %5, %6 : vector<16x512xf32>
    %8 = arith.truncf %7 : vector<16x512xf32> to vector<16x512xbf16>
    %c0_6 = arith.constant 0 : index
    %c0_7 = arith.constant 0 : index
    %9 = vector.load %arg4[%c0_6, %c0_7] : memref<512x256xbf16, #tpu.memory_space<vmem>>, vector<512x256xbf16>
    %cst_8 = arith.constant dense<0.000000e+00> : vector<16x256xf32>
    %10 = tpu.matmul %8, %9, %cst_8 {dimension_numbers = #tpu.dot_dimension_numbers<[1], [0], [0], [1], [0, 0, 1, 1], [], []>} : vector<16x512xbf16>, vector<512x256xbf16>, vector<16x256xf32> -> vector<16x256xf32>
    %c0_9 = arith.constant 0 : index
    %c0_10 = arith.constant 0 : index
    %11 = vector.load %arg5[%c0_9, %c0_10] : memref<1x256xf32, #tpu.memory_space<vmem>>, vector<1x256xf32>
    %12 = vector.broadcast %11 : vector<1x256xf32> to vector<16x256xf32>
    %13 = arith.addf %10, %12 : vector<16x256xf32>
    %cst_11 = arith.constant 0.000000e+00 : f32
    %14 = vector.broadcast %cst_11 : f32 to vector<16x256xf32>
    %15 = arith.maximumf %13, %14 : vector<16x256xf32>
    %16 = arith.truncf %15 : vector<16x256xf32> to vector<16x256xbf16>
    %c0_12 = arith.constant 0 : index
    %c0_13 = arith.constant 0 : index
    %17 = vector.load %arg6[%c0_12, %c0_13] : memref<256x128xbf16, #tpu.memory_space<vmem>>, vector<256x128xbf16>
    %cst_14 = arith.constant dense<0.000000e+00> : vector<16x128xf32>
    %18 = tpu.matmul %16, %17, %cst_14 {dimension_numbers = #tpu.dot_dimension_numbers<[1], [0], [0], [1], [0, 0, 1, 1], [], []>} : vector<16x256xbf16>, vector<256x128xbf16>, vector<16x128xf32> -> vector<16x128xf32>
    %c0_15 = arith.constant 0 : index
    %c0_16 = arith.constant 0 : index
    %19 = vector.load %arg7[%c0_15, %c0_16] : memref<1x128xf32, #tpu.memory_space<vmem>>, vector<1x128xf32>
    %20 = vector.broadcast %19 : vector<1x128xf32> to vector<16x128xf32>
    %21 = arith.addf %18, %20 : vector<16x128xf32>
    %22 = math.tanh %21 : vector<16x128xf32>
    %cst_17 = arith.constant 2.000000e+00 : f32
    %23 = vector.broadcast %cst_17 : f32 to vector<16x128xf32>
    %24 = arith.mulf %23, %22 : vector<16x128xf32>
    %c0_18 = arith.constant 0 : index
    %c0_19 = arith.constant 0 : index
    %25 = vector.load %arg8[%c0_18, %c0_19] : memref<16x128xf32, #tpu.memory_space<vmem>>, vector<16x128xf32>
    tpu.vector_store %arg8[%c0_18, %c0_19], %24 {strides = array<i32>} : memref<16x128xf32, #tpu.memory_space<vmem>>, vector<16x128xf32>,
    return
  }
  func.func @transform_0(%arg0: i32) -> (i32, i32) {
    %c0_i32 = arith.constant 0 : i32
    %c0_i32_0 = arith.constant 0 : i32
    return %arg0, %c0_i32 : i32, i32
  }
  func.func @transform_1(%arg0: i32) -> (i32, i32) {
    %c0_i32 = arith.constant 0 : i32
    %c0_i32_0 = arith.constant 0 : i32
    %c0_i32_1 = arith.constant 0 : i32
    return %c0_i32, %c0_i32_0 : i32, i32
  }
  func.func @transform_2(%arg0: i32) -> (i32, i32) {
    %c0_i32 = arith.constant 0 : i32
    %c0_i32_0 = arith.constant 0 : i32
    %c0_i32_1 = arith.constant 0 : i32
    return %c0_i32, %c0_i32_0 : i32, i32
  }
  func.func @transform_3(%arg0: i32) -> (i32, i32) {
    %c0_i32 = arith.constant 0 : i32
    %c0_i32_0 = arith.constant 0 : i32
    %c0_i32_1 = arith.constant 0 : i32
    return %c0_i32, %c0_i32_0 : i32, i32
  }
  func.func @transform_4(%arg0: i32) -> (i32, i32) {
    %c0_i32 = arith.constant 0 : i32
    %c0_i32_0 = arith.constant 0 : i32
    %c0_i32_1 = arith.constant 0 : i32
    return %c0_i32, %c0_i32_0 : i32, i32
  }
  func.func @transform_5(%arg0: i32) -> (i32, i32) {
    %c0_i32 = arith.constant 0 : i32
    %c0_i32_0 = arith.constant 0 : i32
    %c0_i32_1 = arith.constant 0 : i32
    return %c0_i32, %c0_i32_0 : i32, i32
  }
  func.func @transform_6(%arg0: i32) -> (i32, i32) {
    %c0_i32 = arith.constant 0 : i32
    %c0_i32_0 = arith.constant 0 : i32
    %c0_i32_1 = arith.constant 0 : i32
    return %c0_i32, %c0_i32_0 : i32, i32
  }
  func.func @transform_7(%arg0: i32) -> (i32, i32) {
    %c0_i32 = arith.constant 0 : i32
    %c0_i32_0 = arith.constant 0 : i32
    return %arg0, %c0_i32 : i32, i32
  }
}

</mosaic_0001>

<bundles_post_ra>
// kernel: tpu_custom_call.1
= control target key start
LH: loop header
LB: loop body
LE: loop exit
PB: predicated region body
PF: predicated region fallthrough
CT: control target
= control target key end

     0   :  { %12 = vsyncpa [#allocation3], 0  ;;  %s1411_s0 = inlined_call_operand.hbm [shape: bf16[16,16], index: 0, kind: input, shape index: {}]   ;;  %s1412_s1 = inlined_call_operand.hbm [shape: bf16[16,512], index: 1, kind: input, shape index: {}]   ;;  %s1413_s2 = inlined_call_operand.hbm [shape: f32[1,512], index: 2, kind: input, shape index: {}]   ;;  %s1414_s3 = inlined_call_operand.hbm [shape: bf16[512,256], index: 3, kind: input, shape index: {}]   ;;  %s1415_s4 = inlined_call_operand.vmem [shape: f32[1,256], index: 4, kind: input, shape index: {}]   ;;  %s1416_s5 = inlined_call_operand.hbm [shape: bf16[256,128], index: 5, kind: input, shape index: {}]   ;;  %s1417_s6 = inlined_call_operand.vmem [shape: f32[1,128], index: 6, kind: input, shape index: {}]   ;;  %s1418_s7 = inlined_call_operand.hbm [shape: f32[16,128], index: 7, kind: output, shape index: {}]  }
   0x1   :  { %13 = vsyncpa [#allocation6], 0 }
   0x2   :  { %14 = vsyncpa [#allocation9], 0 }
   0x3   :  { %15 = vsyncpa [#allocation4], 0  ;;  %s1312_s24 = smov [#allocation5]  }
   0x4   :  { %s33_s25 = sshll.u32 %s1312_s24, 4  ;;  %s34_s25 = int_to_ptr.vmem [resolvable:$true] %s33_s25 }
   0x5   :  { %s1192_s26 = scalar_lea.vmem %s34_s25, 512  ;;  %p1197_p1 = scmp.lt.s32.totalorder %s34_s25, %s34_s25 }
   0x6   :  { %p1193_p0 = scmp.ne.s32.totalorder %s34_s25, %s1192_s26  ;;  %p1198_p2 = scmp.lt.s32.totalorder %s1192_s26, %s1192_s26 }
   0x8   :  { %p1199_p3 = por %p1198_p2, %p1197_p1 }
   0xa   :  { %p1200_p4 = pnand %p1199_p3, %p1193_p0 }
   0xc   :  { %1203 = shalt.err (!%p1200_p4)
}
   0xd   :  { %s1313_s27 = smov 256   ;;  %s1314_s28 = smov 16  }
   0xe   :  { %39 = dma.hbm_to_vmem [thread:$0]  %s1412_s1, 512, %s34_s25, [#allocation6], %s1313_s27, %s1313_s27, %s1314_s28  }
   0xf   :  { %s1315_s8 = smov [#allocation8]  }
  0x10   :  { %s55_s9 = sshll.u32 %s1315_s8, 4  ;;  %s56_s9 = int_to_ptr.vmem [resolvable:$true] %s55_s9 }
  0x11   :  { %s1212_s10 = scalar_lea.vmem %s56_s9, 8192  ;;  %p1217_p6 = scmp.lt.s32.totalorder %s56_s9, %s56_s9 }
  0x12   :  { %p1213_p5 = scmp.ne.s32.totalorder %s56_s9, %s1212_s10  ;;  %p1218_p7 = scmp.lt.s32.totalorder %s1212_s10, %s1212_s10 }
  0x14   :  { %p1219_p8 = por %p1218_p7, %p1217_p6 }
  0x16   :  { %p1220_p9 = pnand %p1219_p8, %p1213_p5 }
  0x18   :  { %1223 = shalt.err (!%p1220_p9)
}
  0x19   :  { %s1316_s11 = smov 128   ;;  %s1317_s12 = smov 8  }
  0x1a   :  { %61 = dma.hbm_to_vmem [thread:$0]  %s1414_s3, 8192, %s56_s9, [#allocation9], %s1316_s11, %s1316_s11, %s1317_s12  }
  0x1b   :  { %s1318_s1 = smov [#allocation2]  }
  0x1c   :  { %s21_s15 = sshll.u32 %s1318_s1, 4  ;;  %s22_s15 = int_to_ptr.vmem [resolvable:$true] %s21_s15 }
  0x1d   :  { %s1232_s16 = scalar_lea.vmem %s22_s15, 128  ;;  %p1237_p11 = scmp.lt.s32.totalorder %s22_s15, %s22_s15 }
  0x1e   :  { %p1233_p10 = scmp.ne.s32.totalorder %s22_s15, %s1232_s16  ;;  %p1238_p12 = scmp.lt.s32.totalorder %s1232_s16, %s1232_s16 }
  0x20   :  { %p1239_p13 = por %p1238_p12, %p1237_p11 }
  0x22   :  { %p1240_p0 = pnand %p1239_p13, %p1233_p10 }
  0x24   :  { %1243 = shalt.err (!%p1240_p0)
}
  0x25   :  { %s1319_s17 = smov 64   ;;  %s1320_s18 = smov 4  }
  0x26   :  { %27 = dma.hbm_to_vmem [thread:$0]  %s1411_s0, 128, %s22_s15, [#allocation3], %s1319_s17, %s1319_s17, %s1320_s18  }
  0x27   :  { %s1321_s21 = smov [#allocation7]   ;;  %s1322_s3 = smov [#allocation10]  }
  0x28   :  { %s46_s22 = sshll.u32 %s1321_s21, 4  ;;  %s69_s23 = sshll.u32 %s1322_s3, 4  ;;  %s47_s22 = int_to_ptr.vmem [resolvable:$true] %s46_s22  ;;  %s70_s23 = int_to_ptr.vmem [resolvable:$true] %s69_s23 }
  0x29   :  { %s1252_s24 = scalar_lea.vmem %s47_s22, 64  ;;  %p1257_p2 = scmp.lt.s32.totalorder %s47_s22, %s47_s22 }
  0x2a   :  { %p1253_p1 = scmp.ne.s32.totalorder %s47_s22, %s1252_s24  ;;  %p1258_p3 = scmp.lt.s32.totalorder %s1252_s24, %s1252_s24 }
  0x2c   :  { %p1259_p4 = por %p1258_p3, %p1257_p2 }
  0x2e   :  { %p1260_p5 = pnand %p1259_p4, %p1253_p1 }
  0x30   :  { %1263 = shalt.err (!%p1260_p5)
}
  0x31   :  { %49 = dma.hbm_to_vmem [thread:$0]  %s1413_s2, 64, %s47_s22, [#allocation6]  }
  0x32   :  { %s1272_s27 = scalar_lea.vmem %s70_s23, 2048  ;;  %p1277_p7 = scmp.lt.s32.totalorder %s70_s23, %s70_s23 }
  0x33   :  { %p1273_p6 = scmp.ne.s32.totalorder %s70_s23, %s1272_s27  ;;  %p1278_p8 = scmp.lt.s32.totalorder %s1272_s27, %s1272_s27 }
  0x35   :  { %p1279_p9 = por %p1278_p8, %p1277_p7 }
  0x37   :  { %p1280_p10 = pnand %p1279_p9, %p1273_p6 }
  0x39   :  { %1283 = shalt.err (!%p1280_p10)
}
  0x3a   :  { %75 = dma.hbm_to_vmem [thread:$0]  %s1416_s5, 2048, %s70_s23, [#allocation9], %s1319_s17, %s1319_s17, %s1320_s18  }
  0x3b   :  { %1304 = dma.done.wait [#allocation3], 128  }
  0x3c   :  { %1305 = vsyncadd [#allocation3], 4294967168 }
  0x3d   :  { %1306 = dma.done.wait [#allocation6], 576  }
  0x3e   :  { %1307 = vsyncadd [#allocation6], 4294966720 }
  0x3f   :  { %1308 = dma.done.wait [#allocation9], 10240  }
  0x40   :  { %1309 = vsyncadd [#allocation9], 4294957056  ;;  %v1323_v0 = vmov 0   ;;  %v1061_v1 = vld [vmem:[#allocation5 + $0x4] ss:$16 sps:$4 sm:$0xff]   ;;  %v1064_v3 = vld [vmem:[#allocation2] sm:$0xff]  }
  0x41   :  { %183 = vmatprep.mubr.bf16.mxu1 %v1323_v0  ;;  %v1063_v2 = vld [vmem:[#allocation5] ss:$16 sps:$4 sm:$0xff]   ;;  %165 = vmatprep.subr.bf16.mxu1 %v1061_v1  ;;  %vm147_vm0 = vcmask 130048   ;;  %v1065_v4 = vld [vmem:[#allocation5 + $0x8] ss:$16 sps:$4 sm:$0xff]   ;;  %s1324_s30 = smov [#allocation11]  }
  0x42   :  { %166 = vmatpush1.bf16.msra.mxu1 %v1063_v2  ;;  %v1067_v5 = vld [vmem:[#allocation5 + $0xc] ss:$16 sps:$4 sm:$0xff]   ;;  %v1068_v6 = vld [vmem:[#allocation8 + $0x74] ss:$8 sps:$4 sm:$0xff]   ;;  %v1071_v8 = vld [vmem:[#allocation8 + $0x64] ss:$8 sps:$4 sm:$0xff]  }
  0x43   :  { %v1070_v7 = vld [vmem:[#allocation8 + $0x70] ss:$8 sps:$4 sm:$0xff]   ;;  %208 = vmatprep.subr.bf16.mxu1 %v1067_v5  ;;  %645 = vmatprep.subr.bf16.mxu0 %v1068_v6  ;;  %v1073_v9 = vld [vmem:[#allocation8 + $0x60] ss:$8 sps:$4 sm:$0xff]   ;;  %v1078_v10 = vld [vmem:[#allocation8 + $0x174] ss:$8 sps:$4 sm:$0xff]  }
  0x44   :  { %646 = vmatpush1.bf16.msra.mxu0 %v1070_v7  ;;  %v1074_v11 = vld [vmem:[#allocation8 + $0x54] ss:$8 sps:$4 sm:$0xff]   ;;  %v1076_v12 = vld [vmem:[#allocation8 + $0x170] ss:$8 sps:$4 sm:$0xff]   ;;  %v1084_v14 = vld [vmem:[#allocation8 + $0x164] ss:$8 sps:$4 sm:$0xff]   ;;  %v102_v7 = vlaneseq }
  0x45   :  { %943 = vmatmul.mubr.msk.bf16.vlgmr.msra.gmra.mxu1 %vm147_vm0, %v1064_v3  ;;  %647 = vmatprep.subr.bf16.mxu0 %v1071_v8  ;;  %v1079_v13 = vld [vmem:[#allocation8 + $0x50] ss:$8 sps:$4 sm:$0xff]   ;;  %v1080_v15 = vld [vmem:[#allocation8 + $0x44] ss:$8 sps:$4 sm:$0xff]   ;;  %v1082_v16 = vld [vmem:[#allocation8 + $0x160] ss:$8 sps:$4 sm:$0xff]  }
  0x46   :  { %209 = vmatpush1.bf16.msra.mxu1 %v1065_v4  ;;  %226 = vmatprep.mubr.bf16.mxu1 %v1323_v0  ;;  %v1085_v17 = vld [vmem:[#allocation8 + $0x40] ss:$8 sps:$4 sm:$0xff]   ;;  %v1090_v18 = vld [vmem:[#allocation8 + $0x154] ss:$8 sps:$4 sm:$0xff]   ;;  %v1088_v20 = vld [vmem:[#allocation8 + $0x150] ss:$8 sps:$4 sm:$0xff]  }
  0x47   :  { %688 = vmatprep.subr.bf16.mxu1 %v1078_v10  ;;  %v1086_v19 = vld [vmem:[#allocation8 + $0x34] ss:$8 sps:$4 sm:$0xff]   ;;  %v1091_v21 = vld [vmem:[#allocation8 + $0x30] ss:$8 sps:$4 sm:$0xff]   ;;  %v1096_v22 = vld [vmem:[#allocation8 + $0x144] ss:$8 sps:$4 sm:$0xff]  }
  0x48   :  { %648 = vmatpush1.bf16.msra.mxu0 %v1073_v9  ;;  %v1092_v23 = vld [vmem:[#allocation8 + $0x24] ss:$8 sps:$4 sm:$0xff]   ;;  %v1094_v24 = vld [vmem:[#allocation8 + $0x140] ss:$8 sps:$4 sm:$0xff]   ;;  %v1102_v26 = vld [vmem:[#allocation8 + $0x134] ss:$8 sps:$4 sm:$0xff]  }
  0x49   :  { %649 = vmatprep.subr.bf16.mxu0 %v1074_v11  ;;  %v1097_v25 = vld [vmem:[#allocation8 + $0x20] ss:$8 sps:$4 sm:$0xff]   ;;  %v1098_v27 = vld [vmem:[#allocation8 + $0x14] ss:$8 sps:$4 sm:$0xff]   ;;  %v1100_v28 = vld [vmem:[#allocation8 + $0x130] ss:$8 sps:$4 sm:$0xff]  }
  0x4a   :  { %v1103_v29 = vld [vmem:[#allocation8 + $0x10] ss:$8 sps:$4 sm:$0xff]   ;;  %v1108_v30 = vld [vmem:[#allocation8 + $0x124] ss:$8 sps:$4 sm:$0xff]   ;;  %v1106_v32 = vld [vmem:[#allocation8 + $0x120] ss:$8 sps:$4 sm:$0xff]  }
  0x4b   :  { %v1104_v31 = vld [vmem:[#allocation8 + $0x4] ss:$8 sps:$4 sm:$0xff]   ;;  %v1109_v33 = vld [vmem:[#allocation8] ss:$8 sps:$4 sm:$0xff]   ;;  %v1114_v34 = vld [vmem:[#allocation8 + $0x114] ss:$8 sps:$4 sm:$0xff]  }
  0x4c   :  { %650 = vmatpush1.bf16.msra.mxu0 %v1079_v13  ;;  %v1110_v35 = vld [vmem:[#allocation8 + $0xf4] ss:$8 sps:$4 sm:$0xff]   ;;  %v1112_v36 = vld [vmem:[#allocation8 + $0x110] ss:$8 sps:$4 sm:$0xff]   ;;  %v1116_v38 = vld [vmem:[#allocation8 + $0xe4] ss:$8 sps:$4 sm:$0xff]  }
  0x4d   :  { %944 = vmatmul.mubr.msk.bf16.vlgmr.msra.gmra.mxu1 %vm147_vm0, %v1064_v3  ;;  %651 = vmatprep.subr.bf16.mxu0 %v1080_v15  ;;  %v1115_v37 = vld [vmem:[#allocation8 + $0xf0] ss:$8 sps:$4 sm:$0xff]   ;;  %v1120_v39 = vld [vmem:[#allocation8 + $0x104] ss:$8 sps:$4 sm:$0xff]   ;;  %v1118_v40 = vld [vmem:[#allocation8 + $0x100] ss:$8 sps:$4 sm:$0xff]  }
  0x4e   :  { %689 = vmatpush1.bf16.msra.mxu1 %v1076_v12  ;;  %v1121_v41 = vld [vmem:[#allocation8 + $0xe0] ss:$8 sps:$4 sm:$0xff]   ;;  %v1126_v42 = vld [vmem:[#allocation8 + $0x1f4] ss:$8 sps:$4 sm:$0xff]   ;;  %v1124_v44 = vld [vmem:[#allocation8 + $0x1f0] ss:$8 sps:$4 sm:$0xff]  }
  0x4f   :  { %690 = vmatprep.subr.bf16.mxu1 %v1084_v14  ;;  %v1122_v43 = vld [vmem:[#allocation8 + $0xd4] ss:$8 sps:$4 sm:$0xff]   ;;  %v1127_v45 = vld [vmem:[#allocation8 + $0xd0] ss:$8 sps:$4 sm:$0xff]   ;;  %v1132_v46 = vld [vmem:[#allocation8 + $0x1e4] ss:$8 sps:$4 sm:$0xff]  }
  0x50   :  { %652 = vmatpush1.bf16.msra.mxu0 %v1085_v17  ;;  %v1128_v47 = vld [vmem:[#allocation8 + $0xc4] ss:$8 sps:$4 sm:$0xff]   ;;  %v1130_v48 = vld [vmem:[#allocation8 + $0x1e0] ss:$8 sps:$4 sm:$0xff]   ;;  %v1138_v50 = vld [vmem:[#allocation8 + $0x1d4] ss:$8 sps:$4 sm:$0xff]  }
  0x51   :  { %653 = vmatprep.subr.bf16.mxu0 %v1086_v19  ;;  %v1133_v49 = vld [vmem:[#allocation8 + $0xc0] ss:$8 sps:$4 sm:$0xff]   ;;  %v1134_v51 = vld [vmem:[#allocation8 + $0xb4] ss:$8 sps:$4 sm:$0xff]   ;;  %v1136_v52 = vld [vmem:[#allocation8 + $0x1d0] ss:$8 sps:$4 sm:$0xff]  }
  0x52   :  { %691 = vmatpush1.bf16.msra.mxu1 %v1082_v16  ;;  %v1139_v53 = vld [vmem:[#allocation8 + $0xb0] ss:$8 sps:$4 sm:$0xff]   ;;  %v1140_v54 = vld [vmem:[#allocation8 + $0xa4] ss:$8 sps:$4 sm:$0xff]   ;;  %v1142_v56 = vld [vmem:[#allocation8 + $0x1c0] ss:$8 sps:$4 sm:$0xff]  }
  0x53   :  { %692 = vmatprep.subr.bf16.mxu1 %v1090_v18  ;;  %v1144_v55 = vld [vmem:[#allocation8 + $0x1c4] ss:$8 sps:$4 sm:$0xff]   ;;  %v1145_v57 = vld [vmem:[#allocation8 + $0xa0] ss:$8 sps:$4 sm:$0xff]   ;;  %v1146_v58 = vld [vmem:[#allocation8 + $0x94] ss:$8 sps:$4 sm:$0xff]  }
  0x54   :  { %654 = vmatpush1.bf16.msra.mxu0 %v1091_v21  ;;  %v1150_v59 = vld [vmem:[#allocation8 + $0x1b4] ss:$8 sps:$4 sm:$0xff]   ;;  %v1148_v60 = vld [vmem:[#allocation8 + $0x1b0] ss:$8 sps:$4 sm:$0xff]   ;;  %v1152_v62 = vld [vmem:[#allocation8 + $0x84] ss:$8 sps:$4 sm:$0xff]  }
  0x55   :  { %655 = vmatprep.subr.bf16.mxu0 %v1092_v23  ;;  %v1151_v61 = vld [vmem:[#allocation8 + $0x90] ss:$8 sps:$4 sm:$0xff]   ;;  %v1156_v63 = vld [vmem:[#allocation8 + $0x1a4] ss:$8 sps:$4 sm:$0xff]   ;;  %v1154_v0 = vld [vmem:[#allocation8 + $0x1a0] ss:$8 sps:$4 sm:$0xff]  }
  0x56   :  { %693 = vmatpush1.bf16.msra.mxu1 %v1088_v20  ;;  %v1157_v1 = vld [vmem:[#allocation8 + $0x80] ss:$8 sps:$4 sm:$0xff]   ;;  %v1160_v2 = vld [vmem:[#allocation8 + $0x194] ss:$8 sps:$4 sm:$0xff]   ;;  %v1158_v3 = vld [vmem:[#allocation8 + $0x190] ss:$8 sps:$4 sm:$0xff]  }
  0x57   :  { %694 = vmatprep.subr.bf16.mxu1 %v1096_v22  ;;  %v1163_v4 = vld [vmem:[#allocation8 + $0x184] ss:$8 sps:$4 sm:$0xff]   ;;  %v1161_v5 = vld [vmem:[#allocation8 + $0x180] ss:$8 sps:$4 sm:$0xff]   ;;  %v1164_v6 = vld [vmem:[#allocation10 + $0x78] sm:$0xff]   ;;  %v1385_v8 = vshrl.u32 %v102_v7, 7 }
  0x58   :  { %656 = vmatpush1.bf16.msra.mxu0 %v1097_v25  ;;  %v100_v11 = vld [vmem:[#allocation7] sm:$0xf]  ;;  %s924_s8 = sshll.u32 %s1324_s30, 4  ;;  %s925_s8 = int_to_ptr.vmem [resolvable:$true] %s924_s8 }
  0x59   :  { %657 = vmatprep.subr.bf16.mxu0 %v1098_v27  ;;  %v108_v9 = vsub.s32 1, %v1385_v8  ;;  %v104_v10 = vsub.s32 0, %v1385_v8  ;;  %v116_v19 = vsub.s32 3, %v1385_v8  ;;  %v112_v22 = vsub.s32 2, %v1385_v8  ;;  %s1284_s9 = scalar_lea.vmem %s925_s8, 256  ;;  %p1289_p12 = scmp.lt.s32.totalorder %s925_s8, %s925_s8 }
  0x5a   :  { %695 = vmatpush1.bf16.msra.mxu1 %v1094_v24  ;;  %p1285_p11 = scmp.ne.s32.totalorder %s925_s8, %s1284_s9  ;;  %p1290_p13 = scmp.lt.s32.totalorder %s1284_s9, %s1284_s9 }
  0x5b   :  { %696 = vmatprep.subr.bf16.mxu1 %v1102_v26  ;;  %v109_v13 = vrot.slane %v100_v11, %v108_v9  ;;  %v105_v14 = vrot.slane %v100_v11, %v104_v10 }
  0x5c   :  { %658 = vmatpush1.bf16.msra.mxu0 %v1103_v29  ;;  %p1291_p0 = por %p1290_p13, %p1289_p12 }
  0x5d   :  { %659 = vmatprep.subr.bf16.mxu0 %v1104_v31 }
  0x5e   :  { %697 = vmatpush1.bf16.msra.mxu1 %v1100_v28  ;;  %v117_v28 = vrot.slane %v100_v11, %v116_v19  ;;  %p1292_p1 = pnand %p1291_p0, %p1285_p11 }
  0x5f   :  { %698 = vmatprep.subr.bf16.mxu1 %v1108_v30  ;;  %v113_v30 = vrot.slane %v100_v11, %v112_v22 }
  0x60   :  { %660 = vmatpush1.bf16.msra.mxu0 %v1109_v33  ;;  %v1165_v33 = vld [vmem:[#allocation10 + $0x38] sm:$0xff]  }
  0x61   :  { %661 = vmatprep.subr.bf16.mxu0 %v1110_v35 }
  0x62   :  { %699 = vmatpush1.bf16.msra.mxu1 %v1106_v32 }
  0x63   :  { %700 = vmatprep.subr.bf16.mxu1 %v1114_v34 }
  0x64   :  { %662 = vmatpush2.bf16.msra.mxu0 %v1115_v37 }
  0x65   :  { %663 = vmatprep.subr.bf16.mxu0 %v1116_v38 }
  0x66   :  { %701 = vmatpush1.bf16.msra.mxu1 %v1112_v36  ;;  %v1166_v36 = vld [vmem:[#allocation10 + $0x70] sm:$0xff]  }
  0x67   :  { %702 = vmatprep.subr.bf16.mxu1 %v1120_v39 }
  0x68   :  { %664 = vmatpush2.bf16.msra.mxu0 %v1121_v41 }
  0x69   :  { %665 = vmatprep.subr.bf16.mxu0 %v1122_v43 }
  0x6a   :  { %703 = vmatpush1.bf16.msra.mxu1 %v1118_v40 }
  0x6b   :  { %704 = vmatprep.subr.bf16.mxu1 %v1126_v42  ;;  %v1167_v42 = vld [vmem:[#allocation10 + $0x30] sm:$0xff]  }
  0x6c   :  { %666 = vmatpush2.bf16.msra.mxu0 %v1127_v45 }
  0x6d   :  { %667 = vmatprep.subr.bf16.mxu0 %v1128_v47 }
  0x6e   :  { %705 = vmatpush2.bf16.msra.mxu1 %v1124_v44  ;;  %v1168_v44 = vld [vmem:[#allocation10 + $0x68] sm:$0xff]  }
  0x6f   :  { %706 = vmatprep.subr.bf16.mxu1 %v1132_v46 }
  0x70   :  { %668 = vmatpush2.bf16.msra.mxu0 %v1133_v49  ;;  %v1169_v49 = vld [vmem:[#allocation10 + $0x28] sm:$0xff]  }
  0x71   :  { %669 = vmatprep.subr.bf16.mxu0 %v1134_v51  ;;  %v1170_v51 = vld [vmem:[#allocation10 + $0x60] sm:$0xff]  }
  0x72   :  { %707 = vmatpush2.bf16.msra.mxu1 %v1130_v48 }
  0x73   :  { %708 = vmatprep.subr.bf16.mxu1 %v1138_v50 }
  0x74   :  { %670 = vmatpush2.bf16.msra.mxu0 %v1139_v53  ;;  %v1172_v53 = vld [vmem:[#allocation10 + $0x58] sm:$0xff]  }
  0x75   :  { %671 = vmatprep.subr.bf16.mxu0 %v1140_v54  ;;  %v1173_v54 = vld [vmem:[#allocation10 + $0x18] sm:$0xff]  }
  0x76   :  { %709 = vmatpush2.bf16.msra.mxu1 %v1136_v52  ;;  %v1171_v52 = vld [vmem:[#allocation10 + $0x20] sm:$0xff]  }
  0x77   :  { %710 = vmatprep.subr.bf16.mxu1 %v1144_v55  ;;  %v1174_v55 = vld [vmem:[#allocation10 + $0x50] sm:$0xff]  }
  0x78   :  { %672 = vmatpush2.bf16.msra.mxu0 %v1145_v57  ;;  %v1176_v57 = vld [vmem:[#allocation10 + $0x48] sm:$0xff]  }
  0x79   :  { %673 = vmatprep.subr.bf16.mxu0 %v1146_v58  ;;  %v1177_v58 = vld [vmem:[#allocation10 + $0x8] sm:$0xff]  }
  0x7a   :  { %711 = vmatpush2.bf16.msra.mxu1 %v1142_v56  ;;  %v1175_v56 = vld [vmem:[#allocation10 + $0x10] sm:$0xff]  }
  0x7b   :  { %712 = vmatprep.subr.bf16.mxu1 %v1150_v59  ;;  %v1178_v59 = vld [vmem:[#allocation10 + $0x40] sm:$0xff]  }
  0x7c   :  { %674 = vmatpush2.bf16.msra.mxu0 %v1151_v61 }
  0x7d   :  { %675 = vmatprep.subr.bf16.mxu0 %v1152_v62 }
  0x7e   :  { %713 = vmatpush2.bf16.msra.mxu1 %v1148_v60  ;;  %v1179_v60 = vld [vmem:[#allocation10] sm:$0xff]  }
  0x7f   :  { %714 = vmatprep.subr.bf16.mxu1 %v1156_v63  ;;  %v313_v63 = vld [vmem:[%s1415_s4] sm:$0x3] }
  0x80   :  { %676 = vmatpush2.bf16.msra.mxu0 %v1157_v1  ;;  %v322_v1 = vrot.slane %v313_v63, %v108_v9 }
  0x81   :  { %1026 = vmatprep.subr.bf16.mxu0 %v1164_v6 }
  0x82   :  { %715 = vmatpush2.bf16.msra.mxu1 %v1154_v0 }
  0x83   :  { %716 = vmatprep.subr.bf16.mxu1 %v1160_v2  ;;  %v318_v2 = vrot.slane %v313_v63, %v104_v10 }
  0x86   :  { %717 = vmatpush2.bf16.msra.mxu1 %v1158_v3 }
  0x87   :  { %718 = vmatprep.subr.bf16.mxu1 %v1163_v4 }
  0x8a   :  { %719 = vmatpush2.bf16.msra.mxu1 %v1161_v5 }
 0x105   :  { %v185_v12 = vpop.f32.mrf.mxu1 }
 0x106   :  { %v186_v20 = vadd.f32 %v185_v12, %v105_v14 }
 0x107   :  { %v187_v15 = vpop.f32.mrf.mxu1 }
 0x108   :  { %v188_v17 = vadd.f32 %v187_v15, %v109_v13  ;;  %v237_v29 = vmax.f32 %v186_v20, 0.0 }
 0x109   :  { %v189_v16 = vpop.f32.mrf.mxu1 }
 0x10a   :  { %v190_v18 = vadd.f32 %v189_v16, %v105_v14  ;;  %v238_v26 = vmax.f32 %v188_v17, 0.0 }
 0x10b   :  { %v191_v21 = vpop.f32.mrf.mxu1 }
 0x10c   :  { %v192_v23 = vadd.f32 %v191_v21, %v109_v13  ;;  %v241_v24 = vmax.f32 %v190_v18, 0.0 }
 0x10d   :  { %v228_v25 = vpop.f32.mrf.mxu1 }
 0x10e   :  { %v242_v27 = vmax.f32 %v192_v23, 0.0  ;;  %v245_v34 = vpack.c.bf16 %v241_v24, %v237_v29  ;;  %v229_v39 = vadd.f32 %v228_v25, %v113_v30  ;;  %v1009_v23 = vld [vmem:[%s1417_s6] ss:$0 sm:$0xff] }
 0x10f   :  { %v230_v31 = vpop.f32.mrf.mxu1 }
 0x110   :  { %v246_v32 = vpack.c.bf16 %v242_v27, %v238_v26  ;;  %v231_v37 = vadd.f32 %v230_v31, %v117_v28  ;;  %v239_v47 = vmax.f32 %v229_v39, 0.0 }
 0x111   :  { %v232_v35 = vpop.f32.mrf.mxu1 }
 0x112   :  { %v233_v38 = vadd.f32 %v232_v35, %v113_v30  ;;  %677 = vmatprep.mubr.bf16.mxu0 %v246_v32  ;;  %v240_v45 = vmax.f32 %v231_v37, 0.0 }
 0x113   :  { %v234_v40 = vpop.f32.mrf.mxu1  ;;  %678 = vmatmul.mubr.bf16.vlgmr.msra.gmra.mxu0 %v245_v34 }
 0x114   :  { %v235_v41 = vadd.f32 %v234_v40, %v117_v28  ;;  %1027 = vmatpush3.bf16.msra.mxu0 %v1165_v33  ;;  %v243_v43 = vmax.f32 %v233_v38, 0.0 }
 0x115   :  { %1028 = vmatprep.subr.bf16.mxu0 %v1166_v36 }
 0x116   :  { %v244_v46 = vmax.f32 %v235_v41, 0.0  ;;  %v247_v50 = vpack.c.bf16 %v243_v43, %v239_v47 }
 0x118   :  { %v248_v48 = vpack.c.bf16 %v244_v46, %v240_v45  ;;  %1029 = vmatpush3.bf16.msra.mxu0 %v1167_v42 }
 0x119   :  { %1030 = vmatprep.subr.bf16.mxu0 %v1168_v44 }
 0x11a   :  { %720 = vmatprep.mubr.bf16.mxu1 %v248_v48 }
 0x11b   :  { %721 = vmatmul.mubr.bf16.vlgmr.msra.gmra.mxu1 %v247_v50 }
 0x11c   :  { %1031 = vmatpush3.bf16.msra.mxu0 %v1169_v49 }
 0x11d   :  { %1032 = vmatprep.subr.bf16.mxu0 %v1170_v51 }
 0x120   :  { %1033 = vmatpush3.bf16.msra.mxu0 %v1171_v52 }
 0x121   :  { %1034 = vmatprep.subr.bf16.mxu0 %v1172_v53 }
 0x124   :  { %1035 = vmatpush3.bf16.msra.mxu0 %v1173_v54 }
 0x125   :  { %1036 = vmatprep.subr.bf16.mxu0 %v1174_v55 }
 0x128   :  { %1037 = vmatpush3.bf16.msra.mxu0 %v1175_v56 }
 0x129   :  { %1038 = vmatprep.subr.bf16.mxu0 %v1176_v57 }
 0x12c   :  { %1039 = vmatpush3.bf16.msra.mxu0 %v1177_v58 }
 0x12d   :  { %1040 = vmatprep.subr.bf16.mxu0 %v1178_v59 }
 0x130   :  { %1041 = vmatpush3.bf16.msra.mxu0 %v1179_v60 }
 0x1d3   :  { %v679_v61 = vpop.f32.mrf.mxu0 }
 0x1d4   :  { %v680_v11 = vadd.f32 %v679_v61, %v318_v2 }
 0x1d5   :  { %v681_v62 = vpop.f32.mrf.mxu0 }
 0x1d6   :  { %v682_v6 = vadd.f32 %v681_v62, %v322_v1 }
 0x1d7   :  { %v683_v0 = vpop.f32.mrf.mxu0 }
 0x1d8   :  { %v684_v7 = vadd.f32 %v683_v0, %v318_v2 }
 0x1d9   :  { %v685_v4 = vpop.f32.mrf.mxu0 }
 0x1da   :  { %v686_v13 = vadd.f32 %v685_v4, %v322_v1 }
 0x1db   :  { %v722_v3 = vpop.f32.mrf.mxu1 }
 0x1dc   :  { %v723_v16 = vadd.f32 %v722_v3, %v680_v11 }
 0x1dd   :  { %v724_v5 = vpop.f32.mrf.mxu1 }
 0x1de   :  { %v725_v14 = vadd.f32 %v724_v5, %v682_v6  ;;  %v731_v9 = vmax.f32 %v723_v16, 0.0 }
 0x1df   :  { %v726_v12 = vpop.f32.mrf.mxu1 }
 0x1e0   :  { %v727_v15 = vadd.f32 %v726_v12, %v684_v7  ;;  %v732_v20 = vmax.f32 %v725_v14, 0.0 }
 0x1e1   :  { %v728_v17 = vpop.f32.mrf.mxu1 }
 0x1e2   :  { %v729_v18 = vadd.f32 %v728_v17, %v686_v13  ;;  %v733_v19 = vmax.f32 %v727_v15, 0.0 }
 0x1e4   :  { %v734_v21 = vmax.f32 %v729_v18, 0.0  ;;  %v735_v8 = vpack.c.bf16 %v733_v19, %v731_v9 }
 0x1e6   :  { %v736_v22 = vpack.c.bf16 %v734_v21, %v732_v20 }
 0x1e8   :  { %904 = vmatprep.mubr.bf16.mxu0 %v736_v22 }
 0x1e9   :  { %905 = vmatmul.mubr.bf16.vlgmr.msra.gmra.mxu0 %v735_v8 }
 0x2a9   :  { %v1042_v10 = vpop.f32.mrf.mxu0 }
 0x2ab   :  { %v1043_v24 = vpop.f32.mrf.mxu0 }
 0x2ac   :  { %v1044_v25 = vadd.f32 %v1043_v24, %v1042_v10 }
 0x2ad   :  { %v1045_v26 = vpop.f32.mrf.mxu0 }
 0x2ae   :  { %v907_v27 = vadd.f32 %v1044_v25, %v1009_v23 }
 0x2af   :  { %v1046_v28 = vpop.f32.mrf.mxu0 }
 0x2b0   :  { %1180 = vtanh.f32 %v907_v27  ;;  %v1047_v29 = vadd.f32 %v1046_v28, %v1045_v26 }
 0x2b2   :  { %v910_v30 = vadd.f32 %v1047_v29, %v1009_v23 }
 0x2b4   :  { %1182 = vtanh.f32 %v910_v30 }
 0x2bd   :  { %v1181_v31 = vpop.eup %1180 }
 0x2be   :  { %v915_v32 = vmul.f32 2.0, %v1181_v31 }
 0x2c0   :  { %917 = vst [vmem:[#allocation11] sm:$0xff] %v915_v32 }
 0x2c1   :  { %v1183_v33 = vpop.eup %1182 }
 0x2c2   :  { %v916_v34 = vmul.f32 2.0, %v1183_v33 }
 0x2c4   :  { %918 = vst [vmem:[#allocation11 + $0x8] sm:$0xff] %v916_v34 }
 0x2c5   :  { %1295 = shalt.err (!%p1292_p1)
}
 0x2c6   :  { %930 = dma.vmem_to_hbm [thread:$0]  %s925_s8, 256, %s1418_s7, [#allocation4], %s1316_s11, %s1316_s11, %s1317_s12  }
 0x2c7   :  { %1310 = dma.done.wait [#allocation4], 256  }
 0x2c8   :  { %1311 = vsyncadd [#allocation4], 4294967040 }
 0x2c9   :  { %934 = vsyncpa [#allocation3], 1 }
 0x2ca   :  { %935 = vsyncpa [#allocation6], 1 }
 0x2cb   :  { %936 = vsyncpa [#allocation9], 1 }
 0x2cc   :  { %937 = vsyncpa [#allocation4], 1 }

</bundles_post_ra>
